<compile_context>
chip_gen: v7x
topology: tpu7x:2x2x1
jax: 0.10.0
libtpu: 0.0.40
codegen_flags: <defaults>
</compile_context>

<pallas_src>
import math
import jax
import jax.numpy as jnp
from jax.experimental import pallas as pl
from jax.experimental.pallas import tpu as pltpu

# ----- problem sizes (small, consistent with the module's forward) -----
B = 2             # batch
S = 8             # seq_len
BS = B * S        # rows processed by the single kernel invocation
IN = 32           # in_features (hidden_size)
OUT = 32          # out_features
NUM_ADAPTERS = 4
R = 16            # LoRA rank
NR = NUM_ADAPTERS * R          # 64
LORA_ALPHA = 16
SCALING = LORA_ALPHA / R
ROUTER_DIM = 128
LANES = 128                     # lane-dense packing width
INV_SQRT2 = 1.0 / math.sqrt(2.0)


def molora_kernel(x_ref, wa_ref, wb_ref, misc_ref, out_ref):
    x = x_ref[...]                                                     # (BS, IN)

    # (1) fused matmul: lanes 0:32 base (no bias), 32:96 a_all, 96:128 zero, 128:256 router h
    y = jnp.dot(x, wa_ref[...], preferred_element_type=jnp.float32)   # (BS, 2*LANES)
    y_main = y[:, :LANES]                                              # (BS, 128)
    h = y[:, LANES:] + misc_ref[1:2, :]                                # router hidden + r1 bias

    # exact (erf) GELU, matching torch nn.GELU() default
    h = 0.5 * h * (1.0 + jax.lax.erf(h * INV_SQRT2))

    # (2) router second layer, expand_ar folded in: lanes 32:96 hold R-replicated logits,
    #     other lanes get -1e30 from the bias row so they vanish in the softmax.
    logits = jnp.dot(h, wb_ref[0:ROUTER_DIM, :],
                     preferred_element_type=jnp.float32) + misc_ref[2:3, :]   # (BS, 128)
    m = jnp.max(logits, axis=-1, keepdims=True)
    e = jnp.exp(logits - m)                                            # zeros outside 32:96
    denom = jnp.sum(e, axis=-1, keepdims=True)                         # = R * sum_a exp(.)
    w_div = e * pl.reciprocal(denom, approx=True)                      # softmax / R
    # add 1.0 into the base lanes 0:32 so one scale vector both passes base through
    # and weights the LoRA rank columns
    w_full = w_div + misc_ref[3:4, :]                                  # (BS, 128)

    # (3) pick each row's first-token router weights (rows 0 and S) via constant one-hot
    onehot = misc_ref[8:8 + BS, 0:BS]                                  # (BS, BS)
    scale = jnp.dot(onehot, w_full, preferred_element_type=jnp.float32)  # (BS, 128)

    # (4) fused mix: [I_32 ; R*SCALING*B_all^T ; 0] gives base + weighted LoRA; add base bias
    mixed = jnp.dot(y_main * scale, wb_ref[ROUTER_DIM:2 * ROUTER_DIM, :],
                    preferred_element_type=jnp.float32) + misc_ref[0:1, :]    # (BS, 128)
    out_ref[...] = mixed[:, :OUT].astype(out_ref.dtype)


def pack_params(params):
    """One-time (outside jit) packing of module params into 3 kernel-friendly slabs."""
    wb, bb, r1w, r1b, r2w, r2b, la, lb = params

    # --- slab A: contraction dim IN=32 -> (32, 256) = [Wb^T | A_all | 0 | r1^T] ---
    aall = jnp.transpose(la, (2, 0, 1)).reshape(IN, NR)                # col a*R+j = A_a[j,:]
    wa = jnp.zeros((IN, 2 * LANES), jnp.float32)
    wa = wa.at[:, 0:OUT].set(wb.T)
    wa = wa.at[:, OUT:OUT + NR].set(aall)
    wa = wa.at[:, LANES:].set(r1w.T)

    # --- slab B: contraction dim 128 -> (256, 128) ---
    # rows 0:128  : r2^T expanded so column 32+a*R+j = r2w[a, :]
    # rows 128:256: mix matrix [I_32 ; R*SCALING*B_all^T ; 0] in cols 0:32
    r2_exp = jnp.zeros((ROUTER_DIM, LANES), jnp.float32)
    r2_exp = r2_exp.at[:, OUT:OUT + NR].set(jnp.repeat(r2w.T, R, axis=1))
    ball = (R * SCALING) * jnp.transpose(lb, (0, 2, 1)).reshape(NR, OUT)  # row a*R+j = R*s*B_a[:,j]
    wmix = jnp.zeros((LANES, LANES), jnp.float32)
    wmix = wmix.at[0:OUT, 0:OUT].set(jnp.eye(OUT, dtype=jnp.float32))
    wmix = wmix.at[OUT:OUT + NR, 0:OUT].set(ball)
    wb_slab = jnp.concatenate([r2_exp, wmix], axis=0)

    # --- constants slab: (8 + BS, 128) ---
    misc = jnp.zeros((8 + BS, LANES), jnp.float32)
    misc = misc.at[0, 0:OUT].set(bb[0])                                # base bias
    misc = misc.at[1, :].set(r1b[0])                                   # router layer-1 bias
    misc = misc.at[2, :].set(-1e30)                                    # softmax mask ...
    misc = misc.at[2, OUT:OUT + NR].set(jnp.repeat(r2b[0], R))         # ... + replicated r2 bias
    misc = misc.at[3, 0:OUT].set(1.0)                                  # base-passthrough ones
    row_sel = (jnp.arange(BS) // S) * S                                # first-token row per row
    onehot = (jnp.arange(BS)[None, :] == row_sel[:, None]).astype(jnp.float32)
    misc = misc.at[8:8 + BS, 0:BS].set(onehot)

    return wa, wb_slab, misc


def molora_forward(x, packed):
    wa, wb_slab, misc = packed
    bsz, seq, _ = x.shape
    x2d = x.reshape(bsz * seq, IN)
    out = pl.pallas_call(
        molora_kernel,
        out_shape=jax.ShapeDtypeStruct((bsz * seq, OUT), jnp.float32),
        in_specs=[pl.BlockSpec(memory_space=pltpu.MemorySpace.VMEM)] * 4,
        out_specs=pl.BlockSpec(memory_space=pltpu.MemorySpace.VMEM),
    )(x2d, wa, wb_slab, misc)
    return out.reshape(bsz, seq, OUT)


def molora_reference(x, params):
    """Pure-JAX reference mirroring the PyTorch forward."""
    wb, bb, r1w, r1b, r2w, r2b, la, lb = params
    base = jnp.einsum('bsi,oi->bso', x, wb) + bb[0]
    xr = x[:, 0]                                                       # (B, IN)
    h = xr @ r1w.T + r1b[0]
    h = 0.5 * h * (1.0 + jax.lax.erf(h / jnp.sqrt(2.0)))
    logits = h @ r2w.T + r2b[0]
    w = jax.nn.softmax(logits, axis=-1)                                # (B, NA)
    lora = jnp.zeros_like(base)
    for i in range(NUM_ADAPTERS):
        ao = jnp.einsum('bsi,ri->bsr', x, la[i])
        ao = jnp.einsum('bsr,or->bso', ao, lb[i]) * SCALING
        lora = lora + ao * w[:, i][:, None, None]
    return base + lora


def make_params(key):
    ks = jax.random.split(key, 8)
    def uni(k, shape, fan_in):
        bound = 1.0 / math.sqrt(fan_in)
        return jax.random.uniform(k, shape, jnp.float32, -bound, bound)
    wb = uni(ks[0], (OUT, IN), IN)                            # base_linear.weight
    bb = uni(ks[1], (1, OUT), IN)                             # base_linear.bias
    r1w = uni(ks[2], (ROUTER_DIM, IN), IN)                    # router[0].weight
    r1b = uni(ks[3], (1, ROUTER_DIM), IN)                     # router[0].bias
    r2w = uni(ks[4], (NUM_ADAPTERS, ROUTER_DIM), ROUTER_DIM)  # router[2].weight
    r2b = uni(ks[5], (1, NUM_ADAPTERS), ROUTER_DIM)           # router[2].bias
    la = uni(ks[6], (NUM_ADAPTERS, R, IN), IN)                # lora_A (kaiming_uniform-like)
    # PyTorch inits lora_B to zeros; use small random values so the LoRA path is exercised.
    lb = 0.02 * jax.random.normal(ks[7], (NUM_ADAPTERS, OUT, R), jnp.float32)
    return (wb, bb, r1w, r1b, r2w, r2b, la, lb)


if __name__ == "__main__":
    key = jax.random.PRNGKey(0)
    kx, kp = jax.random.split(key)
    x = jax.random.normal(kx, (B, S, IN), jnp.float32)
    params = make_params(kp)

    # one-time packing, outside the jitted per-call path
    packed = jax.block_until_ready(pack_params(params))

    forward = jax.jit(molora_forward)
    out = forward(x, packed)
    out = jax.block_until_ready(out)

    ref = molora_reference(x, params)
    assert out.shape == (B, S, OUT)
    assert jnp.allclose(out, ref, atol=1e-4, rtol=1e-4), \
        f"max err {jnp.max(jnp.abs(out - ref))}"
    print("KERNEL_OK")
</pallas_src>

<mosaic_0001>
module attributes {stable_mosaic.version = 11 : i64} {
  func.func @molora_kernel(%arg0: memref<16x32xf32, #tpu.memory_space<vmem>>, %arg1: memref<32x256xf32, #tpu.memory_space<vmem>>, %arg2: memref<256x128xf32, #tpu.memory_space<vmem>>, %arg3: memref<24x128xf32, #tpu.memory_space<vmem>>, %arg4: memref<16x32xf32, #tpu.memory_space<vmem>>) attributes {dimension_semantics = [], scalar_prefetch = 0 : i64, scratch_operands = 0 : i64, tpu.core_type = #tpu.core_type<tc>} {
    %c0 = arith.constant 0 : index
    %c0_0 = arith.constant 0 : index
    %0 = vector.load %arg0[%c0, %c0_0] : memref<16x32xf32, #tpu.memory_space<vmem>>, vector<16x32xf32>
    %c0_1 = arith.constant 0 : index
    %c0_2 = arith.constant 0 : index
    %1 = vector.load %arg1[%c0_1, %c0_2] : memref<32x256xf32, #tpu.memory_space<vmem>>, vector<32x256xf32>
    %cst = arith.constant dense<0.000000e+00> : vector<16x256xf32>
    %2 = tpu.matmul %0, %1, %cst {dimension_numbers = #tpu.dot_dimension_numbers<[1], [0], [0], [1], [0, 0, 1, 1], [], []>} : vector<16x32xf32>, vector<32x256xf32>, vector<16x256xf32> -> vector<16x256xf32>
    %3 = vector.extract_strided_slice %2 {offsets = [0, 0], sizes = [16, 128], strides = [1, 1]} : vector<16x256xf32> to vector<16x128xf32>
    %4 = vector.extract_strided_slice %2 {offsets = [0, 128], sizes = [16, 128], strides = [1, 1]} : vector<16x256xf32> to vector<16x128xf32>
    %c1 = arith.constant 1 : index
    %c0_3 = arith.constant 0 : index
    %5 = vector.load %arg3[%c1, %c0_3] : memref<24x128xf32, #tpu.memory_space<vmem>>, vector<1x128xf32>
    %6 = vector.broadcast %5 : vector<1x128xf32> to vector<16x128xf32>
    %7 = arith.addf %4, %6 : vector<16x128xf32>
    %cst_4 = arith.constant 5.000000e-01 : f32
    %8 = vector.broadcast %cst_4 : f32 to vector<16x128xf32>
    %9 = arith.mulf %8, %7 : vector<16x128xf32>
    %cst_5 = arith.constant 0.707106769 : f32
    %10 = vector.broadcast %cst_5 : f32 to vector<16x128xf32>
    %11 = arith.mulf %7, %10 : vector<16x128xf32>
    %12 = math.erf %11 : vector<16x128xf32>
    %cst_6 = arith.constant 1.000000e+00 : f32
    %13 = vector.broadcast %cst_6 : f32 to vector<16x128xf32>
    %14 = arith.addf %13, %12 : vector<16x128xf32>
    %15 = arith.mulf %9, %14 : vector<16x128xf32>
    %c0_7 = arith.constant 0 : index
    %c0_8 = arith.constant 0 : index
    %16 = vector.load %arg2[%c0_7, %c0_8] : memref<256x128xf32, #tpu.memory_space<vmem>>, vector<128x128xf32>
    %cst_9 = arith.constant dense<0.000000e+00> : vector<16x128xf32>
    %17 = tpu.matmul %15, %16, %cst_9 {dimension_numbers = #tpu.dot_dimension_numbers<[1], [0], [0], [1], [0, 0, 1, 1], [], []>} : vector<16x128xf32>, vector<128x128xf32>, vector<16x128xf32> -> vector<16x128xf32>
    %c2 = arith.constant 2 : index
    %c0_10 = arith.constant 0 : index
    %18 = vector.load %arg3[%c2, %c0_10] : memref<24x128xf32, #tpu.memory_space<vmem>>, vector<1x128xf32>
    %19 = vector.broadcast %18 : vector<1x128xf32> to vector<16x128xf32>
    %20 = arith.addf %17, %19 : vector<16x128xf32>
    %cst_11 = arith.constant dense<0xFF800000> : vector<16xf32>
    %21 = vector.multi_reduction <maximumf>, %20, %cst_11 [1] : vector<16x128xf32> to vector<16xf32>
    %22 = vector.shape_cast %21 : vector<16xf32> to vector<16x1xf32>
    %23 = vector.broadcast %22 : vector<16x1xf32> to vector<16x128xf32>
    %24 = arith.subf %20, %23 : vector<16x128xf32>
    %25 = math.exp %24 : vector<16x128xf32>
    %cst_12 = arith.constant dense<0.000000e+00> : vector<16xf32>
    %26 = vector.multi_reduction <add>, %25, %cst_12 [1] : vector<16x128xf32> to vector<16xf32>
    %27 = vector.shape_cast %26 : vector<16xf32> to vector<16x1xf32>
    %28 = tpu.reciprocal %27 {approx = true} : vector<16x1xf32> -> vector<16x1xf32>
    %29 = vector.broadcast %28 : vector<16x1xf32> to vector<16x128xf32>
    %30 = arith.mulf %25, %29 : vector<16x128xf32>
    %c3 = arith.constant 3 : index
    %c0_13 = arith.constant 0 : index
    %31 = vector.load %arg3[%c3, %c0_13] : memref<24x128xf32, #tpu.memory_space<vmem>>, vector<1x128xf32>
    %32 = vector.broadcast %31 : vector<1x128xf32> to vector<16x128xf32>
    %33 = arith.addf %30, %32 : vector<16x128xf32>
    %c8 = arith.constant 8 : index
    %c0_14 = arith.constant 0 : index
    %34 = vector.load %arg3[%c8, %c0_14] : memref<24x128xf32, #tpu.memory_space<vmem>>, vector<16x16xf32>
    %cst_15 = arith.constant dense<0.000000e+00> : vector<16x128xf32>
    %35 = tpu.matmul %34, %33, %cst_15 {dimension_numbers = #tpu.dot_dimension_numbers<[1], [0], [0], [1], [0, 0, 1, 1], [], []>} : vector<16x16xf32>, vector<16x128xf32>, vector<16x128xf32> -> vector<16x128xf32>
    %36 = arith.mulf %3, %35 : vector<16x128xf32>
    %c128 = arith.constant 128 : index
    %c0_16 = arith.constant 0 : index
    %37 = vector.load %arg2[%c128, %c0_16] : memref<256x128xf32, #tpu.memory_space<vmem>>, vector<128x128xf32>
    %cst_17 = arith.constant dense<0.000000e+00> : vector<16x128xf32>
    %38 = tpu.matmul %36, %37, %cst_17 {dimension_numbers = #tpu.dot_dimension_numbers<[1], [0], [0], [1], [0, 0, 1, 1], [], []>} : vector<16x128xf32>, vector<128x128xf32>, vector<16x128xf32> -> vector<16x128xf32>
    %c0_18 = arith.constant 0 : index
    %c0_19 = arith.constant 0 : index
    %39 = vector.load %arg3[%c0_18, %c0_19] : memref<24x128xf32, #tpu.memory_space<vmem>>, vector<1x128xf32>
    %40 = vector.broadcast %39 : vector<1x128xf32> to vector<16x128xf32>
    %41 = arith.addf %38, %40 : vector<16x128xf32>
    %42 = vector.extract_strided_slice %41 {offsets = [0, 0], sizes = [16, 32], strides = [1, 1]} : vector<16x128xf32> to vector<16x32xf32>
    %c0_20 = arith.constant 0 : index
    %c0_21 = arith.constant 0 : index
    %43 = vector.load %arg4[%c0_20, %c0_21] : memref<16x32xf32, #tpu.memory_space<vmem>>, vector<16x32xf32>
    tpu.vector_store %arg4[%c0_20, %c0_21], %42 {strides = array<i32>} : memref<16x32xf32, #tpu.memory_space<vmem>>, vector<16x32xf32>,
    return
  }
}

</mosaic_0001>

<bundles_post_ra>
// kernel: molora_forward.1
= control target key start
LH: loop header
LB: loop body
LE: loop exit
PB: predicated region body
PF: predicated region fallthrough
CT: control target
= control target key end

     0   :  { %9 = vsyncpa [#allocation3], 0  ;;  %s975_s0 = inlined_call_operand.hbm [shape: f32[16,32], index: 0, kind: input, shape index: {}]   ;;  %s976_s1 = inlined_call_operand.hbm [shape: f32[32,256], index: 1, kind: input, shape index: {}]   ;;  %s977_s2 = inlined_call_operand.hbm [shape: f32[256,128], index: 2, kind: input, shape index: {}]   ;;  %s978_s3 = inlined_call_operand.hbm [shape: f32[24,128], index: 3, kind: input, shape index: {}]   ;;  %s979_s4 = inlined_call_operand.hbm [shape: f32[16,32], index: 4, kind: output, shape index: {}]  }
   0x1   :  { %10 = vsyncpa [#allocation6], 0 }
   0x2   :  { %11 = vsyncpa [#allocation9], 0 }
   0x3   :  { %12 = vsyncpa [#allocation4], 0  ;;  %s849_s15 = smov [#allocation5]   ;;  %s731_s19 = scalar_lea.hbm %s976_s1, 1024 }
   0x4   :  { %s30_s16 = sshll.u32 %s849_s15, 4  ;;  %p732_p0 = scmp.ne.s32.totalorder %s976_s1, %s731_s19  ;;  %s31_s16 = int_to_ptr.vmem [resolvable:$true] %s30_s16 }
   0x5   :  { %p735_p1 = scmp.lt.u32.totalorder %s731_s19, %s976_s1 }
   0x7   :  { %p737_p2 = pnand %p735_p1, %p732_p0 }
   0x9   :  { %740 = shalt.err (!%p737_p2)
}
   0xa   :  { %s741_s24 = scalar_lea.vmem %s31_s16, 1024  ;;  %p746_p4 = scmp.lt.s32.totalorder %s31_s16, %s31_s16 }
   0xb   :  { %p742_p3 = scmp.ne.s32.totalorder %s31_s16, %s741_s24  ;;  %p747_p5 = scmp.lt.s32.totalorder %s741_s24, %s741_s24 }
   0xd   :  { %p748_p6 = por %p747_p5, %p746_p4 }
   0xf   :  { %p749_p7 = pnand %p748_p6, %p742_p3 }
  0x11   :  { %752 = shalt.err (!%p749_p7)
}
  0x12   :  { %s850_s25 = smov 256   ;;  %s851_s26 = smov 16  }
  0x13   :  { %36 = dma.hbm_to_vmem [thread:$0]  %s976_s1, 1024, %s31_s16, [#allocation6], %s850_s25, %s850_s25, %s851_s26  }
  0x14   :  { %s852_s29 = smov [#allocation2]   ;;  %s753_s7 = scalar_lea.hbm %s975_s0, 256 }
  0x15   :  { %s18_s30 = sshll.u32 %s852_s29, 4  ;;  %p754_p8 = scmp.ne.s32.totalorder %s975_s0, %s753_s7  ;;  %s19_s30 = int_to_ptr.vmem [resolvable:$true] %s18_s30 }
  0x16   :  { %p757_p9 = scmp.lt.u32.totalorder %s753_s7, %s975_s0 }
  0x18   :  { %p759_p10 = pnand %p757_p9, %p754_p8 }
  0x1a   :  { %762 = shalt.err (!%p759_p10)
}
  0x1b   :  { %s763_s12 = scalar_lea.vmem %s19_s30, 256  ;;  %p768_p12 = scmp.lt.s32.totalorder %s19_s30, %s19_s30 }
  0x1c   :  { %p764_p11 = scmp.ne.s32.totalorder %s19_s30, %s763_s12  ;;  %p769_p13 = scmp.lt.s32.totalorder %s763_s12, %s763_s12 }
  0x1e   :  { %p770_p0 = por %p769_p13, %p768_p12 }
  0x20   :  { %p771_p1 = pnand %p770_p0, %p764_p11 }
  0x22   :  { %774 = shalt.err (!%p771_p1)
}
  0x23   :  { %s853_s1 = smov 128   ;;  %s854_s13 = smov 8  }
  0x24   :  { %24 = dma.hbm_to_vmem [thread:$0]  %s975_s0, 256, %s19_s30, [#allocation3], %s853_s1, %s853_s1, %s854_s13  }
  0x25   :  { %s855_s16 = smov [#allocation7]   ;;  %s856_s18 = smov [#allocation8]  }
  0x26   :  { %s42_s17 = sshll.u32 %s855_s16, 4  ;;  %s54_s19 = sshll.u32 %s856_s18, 4  ;;  %s43_s17 = int_to_ptr.vmem [resolvable:$true] %s42_s17  ;;  %s911_s19 = int_to_ptr.vmem [resolvable:$true] %s54_s19 }
  0x27   :  { %s775_s22 = scalar_lea.hbm %s977_s2, 4096 }
  0x28   :  { %p776_p2 = scmp.ne.s32.totalorder %s977_s2, %s775_s22  ;;  %p779_p3 = scmp.lt.u32.totalorder %s775_s22, %s977_s2 }
  0x2a   :  { %p781_p4 = pnand %p779_p3, %p776_p2 }
  0x2c   :  { %784 = shalt.err (!%p781_p4)
}
  0x2d   :  { %s785_s0 = scalar_lea.vmem %s43_s17, 4096  ;;  %p790_p6 = scmp.lt.s32.totalorder %s43_s17, %s43_s17 }
  0x2e   :  { %p786_p5 = scmp.ne.s32.totalorder %s43_s17, %s785_s0  ;;  %p791_p7 = scmp.lt.s32.totalorder %s785_s0, %s785_s0 }
  0x30   :  { %p792_p8 = por %p791_p7, %p790_p6 }
  0x32   :  { %p793_p9 = pnand %p792_p8, %p786_p5 }
  0x34   :  { %796 = shalt.err (!%p793_p9)
}
  0x35   :  { %48 = dma.hbm_to_vmem [thread:$0]  %s977_s2, 4096, %s43_s17, [#allocation6], %s853_s1, %s853_s1, %s854_s13  }
  0x36   :  { %s797_s5 = scalar_lea.hbm %s978_s3, 384 }
  0x37   :  { %p798_p10 = scmp.ne.s32.totalorder %s978_s3, %s797_s5  ;;  %p801_p11 = scmp.lt.u32.totalorder %s797_s5, %s978_s3 }
  0x39   :  { %p803_p12 = pnand %p801_p11, %p798_p10 }
  0x3b   :  { %806 = shalt.err (!%p803_p12)
}
  0x3c   :  { %s807_s10 = scalar_lea.vmem %s911_s19, 384  ;;  %p812_p0 = scmp.lt.s32.totalorder %s911_s19, %s911_s19 }
  0x3d   :  { %p808_p13 = scmp.ne.s32.totalorder %s911_s19, %s807_s10  ;;  %p813_p1 = scmp.lt.s32.totalorder %s807_s10, %s807_s10 }
  0x3f   :  { %p814_p2 = por %p813_p1, %p812_p0 }
  0x41   :  { %p815_p3 = pnand %p814_p2, %p808_p13 }
  0x43   :  { %818 = shalt.err (!%p815_p3)
}
  0x44   :  { %60 = dma.hbm_to_vmem [thread:$0]  %s978_s3, 384, %s911_s19, [#allocation9], %s853_s1, %s853_s1, %s854_s13  }
  0x45   :  { %841 = dma.done.wait [#allocation3], 256  }
  0x46   :  { %842 = vsyncadd [#allocation3], 4294967040 }
  0x47   :  { %843 = dma.done.wait [#allocation6], 5120  }
  0x48   :  { %844 = vsyncadd [#allocation6], 4294962176 }
  0x49   :  { %845 = dma.done.wait [#allocation9], 384  }
  0x4a   :  { %846 = vsyncadd [#allocation9], 4294966912  ;;  %v857_v0 = vmov 0.0   ;;  %v76_v1 = vld [vmem:[#allocation5 + $0x8] sm:$0xff]  ;;  %v78_v2 = vld [vmem:[#allocation5 + $0x18] sm:$0xff]  ;;  %vm83_vm0 = vcmask 261120  }
  0x4b   :  { %154 = vmatprep.mubr.f32.mxu1 %v857_v0  ;;  %v75_v3 = vld [vmem:[#allocation5] sm:$0xff]  ;;  %v633_v4 = vpack.c.bf16 %v78_v2, %v76_v1  ;;  %v77_v5 = vld [vmem:[#allocation5 + $0x10] sm:$0xff]  ;;  %v80_v6 = vld [vmem:[#allocation5 + $0x28] sm:$0xff]  ;;  %vm307_vm1 = vcmask 130048   ;;  %s858_s3 = smov [#allocation10]  }
  0x4c   :  { %v82_v7 = vld [vmem:[#allocation5 + $0x38] sm:$0xff]  ;;  %v635_v8 = vpack.c.bf16 %v77_v5, %v75_v3  ;;  %v79_v10 = vld [vmem:[#allocation5 + $0x20] sm:$0xff]  ;;  %v81_v11 = vld [vmem:[#allocation5 + $0x30] sm:$0xff]  ;;  %s494_s12 = sshll.u32 %s858_s3, 4  ;;  %s495_s12 = int_to_ptr.vmem [resolvable:$true] %s494_s12 }
  0x4d   :  { %v637_v9 = vpack.c.bf16 %v82_v7, %v80_v6  ;;  %634 = vmatprep.subr.bf16.mxu1 %v633_v4  ;;  %v184_v12 = vld [vmem:[#allocation7] sm:$0xff]  ;;  %v185_v13 = vld [vmem:[#allocation7 + $0x8] sm:$0xff]  ;;  %v639_v14 = vpack.c.bf16 %v81_v11, %v79_v10  ;;  %v186_v16 = vld [vmem:[#allocation7 + $0x10] sm:$0xff]  ;;  %s819_s14 = scalar_lea.vmem %s495_s12, 256  ;;  %p824_p5 = scmp.lt.s32.totalorder %s495_s12, %s495_s12 }
  0x4e   :  { %636 = vmatpush1.bf16.msra.mxu1 %v635_v8  ;;  %v641_v15 = vpack.c.bf16 %v185_v13, %v184_v12  ;;  %v187_v17 = vld [vmem:[#allocation7 + $0x18] sm:$0xff]  ;;  %v73_v18 = vld [vmem:[#allocation2] sm:$0xff]  ;;  %v188_v21 = vld [vmem:[#allocation7 + $0x20] sm:$0xff]  ;;  %p820_p4 = scmp.ne.s32.totalorder %s495_s12, %s819_s14  ;;  %p825_p6 = scmp.lt.s32.totalorder %s819_s14, %s819_s14 }
  0x4f   :  { %638 = vmatprep.subr.bf16.mxu1 %v637_v9  ;;  %v645_v19 = vpack.c.bf16 %v187_v17, %v186_v16  ;;  %v74_v20 = vld [vmem:[#allocation2 + $0x8] sm:$0xff]  ;;  %v189_v22 = vld [vmem:[#allocation7 + $0x28] sm:$0xff]  ;;  %v190_v24 = vld [vmem:[#allocation7 + $0x30] sm:$0xff] }
  0x50   :  { %v649_v23 = vpack.c.bf16 %v189_v22, %v188_v21  ;;  %v191_v25 = vld [vmem:[#allocation7 + $0x38] sm:$0xff]  ;;  %v192_v27 = vld [vmem:[#allocation7 + $0x40] sm:$0xff]  ;;  %v193_v28 = vld [vmem:[#allocation7 + $0x48] sm:$0xff]  ;;  %p826_p7 = por %p825_p6, %p824_p5 }
  0x51   :  { %v653_v26 = vpack.c.bf16 %v191_v25, %v190_v24  ;;  %v657_v29 = vpack.c.bf16 %v193_v28, %v192_v27  ;;  %v194_v30 = vld [vmem:[#allocation7 + $0x50] sm:$0xff]  ;;  %v195_v31 = vld [vmem:[#allocation7 + $0x58] sm:$0xff]  ;;  %v196_v33 = vld [vmem:[#allocation7 + $0x60] sm:$0xff] }
  0x52   :  { %640 = vmatpush1.bf16.msra.mxu1 %v639_v14  ;;  %v661_v32 = vpack.c.bf16 %v195_v31, %v194_v30  ;;  %v197_v34 = vld [vmem:[#allocation7 + $0x68] sm:$0xff]  ;;  %v198_v36 = vld [vmem:[#allocation7 + $0x70] sm:$0xff]  ;;  %v199_v37 = vld [vmem:[#allocation7 + $0x78] sm:$0xff]  ;;  %p827_p8 = pnand %p826_p7, %p820_p4 }
  0x53   :  { %642 = vmatprep.subr.bf16.mxu1 %v641_v15  ;;  %v665_v35 = vpack.c.bf16 %v197_v34, %v196_v33  ;;  %v669_v38 = vpack.c.bf16 %v199_v37, %v198_v36  ;;  %v510_v39 = vld [vmem:[#allocation8 + $0x1] ss:$0 sm:$0xff]  ;;  %v511_v56 = vld [vmem:[#allocation8 + $0x2] ss:$0 sm:$0xff]  ;;  %v305_v5 = vld [vmem:[#allocation8 + $0x8] sm:$0xff] }
  0x54   :  { %595 = vmatprep.mubr.msk.f32.mxu0 %vm307_vm1, %v305_v5  ;;  %v512_v11 = vld [vmem:[#allocation8 + $0x3] ss:$0 sm:$0xff]  ;;  %v392_v14 = vld [vmem:[#allocation7 + $0x88] sm:$0xff]  ;;  %v306_v21 = vld [vmem:[#allocation8 + $0x10] sm:$0xff] }
  0x55   :  { %508 = vmatmul.mubr.msk.f32.vlgmr.msra.gmra.mrb[0].mxu1 %vm83_vm0, %v73_v18  ;;  %v391_v13 = vld [vmem:[#allocation7 + $0x80] sm:$0xff]  ;;  %v396_v24 = vld [vmem:[#allocation7 + $0xa8] sm:$0xff]  ;;  %v398_v27 = vld [vmem:[#allocation7 + $0xb8] sm:$0xff] }
  0x56   :  { %160 = vmatprep.mubr.f32.mxu1 %v857_v0  ;;  %644 = vmatpush3.bf16.msra.mxu1 %v641_v15  ;;  %v677_v18 = vpack.c.bf16 %v392_v14, %v391_v13  ;;  %v400_v30 = vld [vmem:[#allocation7 + $0xc8] sm:$0xff]  ;;  %v402_v33 = vld [vmem:[#allocation7 + $0xd8] sm:$0xff] }
  0x57   :  { %646 = vmatprep.subr.bf16.mxu1 %v645_v19  ;;  %v404_v36 = vld [vmem:[#allocation7 + $0xe8] sm:$0xff] }
  0x59   :  { %509 = vmatmul.mubr.msk.f32.gmra.mrb[2].mxu1 %vm83_vm0, %v74_v20  ;;  %v394_v20 = vld [vmem:[#allocation7 + $0x98] sm:$0xff] }
  0x5a   :  { %648 = vmatpush3.bf16.msra.mxu1 %v645_v19  ;;  %v393_v19 = vld [vmem:[#allocation7 + $0x90] sm:$0xff] }
  0x5b   :  { %650 = vmatprep.subr.bf16.mxu1 %v649_v23  ;;  %v681_v22 = vpack.c.bf16 %v394_v20, %v393_v19 }
  0x5e   :  { %652 = vmatpush3.bf16.msra.mxu1 %v649_v23  ;;  %v395_v23 = vld [vmem:[#allocation7 + $0xa0] sm:$0xff] }
  0x5f   :  { %654 = vmatprep.subr.bf16.mxu1 %v653_v26  ;;  %v685_v25 = vpack.c.bf16 %v396_v24, %v395_v23 }
  0x62   :  { %656 = vmatpush3.bf16.msra.mxu1 %v653_v26  ;;  %v397_v26 = vld [vmem:[#allocation7 + $0xb0] sm:$0xff] }
  0x63   :  { %658 = vmatprep.subr.bf16.mxu1 %v657_v29  ;;  %v689_v28 = vpack.c.bf16 %v398_v27, %v397_v26 }
  0x66   :  { %660 = vmatpush3.bf16.msra.mxu1 %v657_v29  ;;  %v399_v29 = vld [vmem:[#allocation7 + $0xc0] sm:$0xff] }
  0x67   :  { %662 = vmatprep.subr.bf16.mxu1 %v661_v32  ;;  %v693_v31 = vpack.c.bf16 %v400_v30, %v399_v29 }
  0x6a   :  { %664 = vmatpush3.bf16.msra.mxu1 %v661_v32  ;;  %v401_v32 = vld [vmem:[#allocation7 + $0xd0] sm:$0xff] }
  0x6b   :  { %666 = vmatprep.subr.bf16.mxu1 %v665_v35  ;;  %v697_v34 = vpack.c.bf16 %v402_v33, %v401_v32 }
  0x6e   :  { %668 = vmatpush3.bf16.msra.mxu1 %v665_v35  ;;  %v403_v35 = vld [vmem:[#allocation7 + $0xe0] sm:$0xff] }
  0x6f   :  { %670 = vmatprep.subr.bf16.mxu1 %v669_v38  ;;  %v701_v37 = vpack.c.bf16 %v404_v36, %v403_v35 }
  0x72   :  { %672 = vmatpush3.bf16.msra.mxu1 %v669_v38  ;;  %v405_v38 = vld [vmem:[#allocation7 + $0xf0] sm:$0xff] }
 0x128   :  { %v950_v40 = vpop.f32.mrb[0].mxu1 }
 0x129   :  { %v158_v41 = vpop.f32.mrb[1].mxu1 }
 0x12a   :  { %v172_v42 = vadd.f32 %v510_v39, %v158_v41 }
 0x12c   :  { %v176_v43 = vmul.f32 0.70710677, %v172_v42  ;;  %v952_v44 = vpop.f32.mrb[2].mxu1  ;;  %v174_v49 = vmul.f32 0.5, %v172_v42 }
 0x12d   :  { %v164_v45 = vpop.f32.mrb[3].mxu1 }
 0x12e   :  { %719 = verf.f32 %v176_v43  ;;  %v173_v46 = vadd.f32 %v510_v39, %v164_v45  ;;  %v406_v39 = vld [vmem:[#allocation7 + $0xf8] sm:$0xff] }
 0x12f   :  { %v705_v41 = vpack.c.bf16 %v406_v39, %v405_v38 }
 0x130   :  { %v177_v47 = vmul.f32 0.70710677, %v173_v46  ;;  %v175_v53 = vmul.f32 0.5, %v173_v46 }
 0x132   :  { %721 = verf.f32 %v177_v47  ;;  %v515_v47 = vld [vmem:[#allocation8] ss:$0 sm:$0xff] }
 0x138   :  { %v720_v48 = vpop.eup %719 }
 0x139   :  { %v180_v50 = vadd.f32 1.0, %v720_v48 }
 0x13b   :  { %v182_v51 = vmul.f32 %v180_v50, %v174_v49 }
 0x13c   :  { %v722_v52 = vpop.eup %721 }
 0x13d   :  { %v181_v54 = vadd.f32 1.0, %v722_v52  ;;  %588 = vmatprep.mubr.f32.mxu1 %v182_v51 }
 0x13f   :  { %v183_v55 = vmul.f32 %v181_v54, %v175_v53 }
 0x141   :  { %589 = vmatmul.mubr.f32.vlgmr.msra.gmra.mrb[4].mxu1 %v183_v55 }
 0x214   :  { %v590_v57 = vpop.f32.mrb[4].mxu1 }
 0x215   :  { %v271_v58 = vpop.f32.mrb[5].mxu1  ;;  %v277_v60 = vadd.f32 %v590_v57, %v511_v56 }
 0x216   :  { %v272_v59 = vadd.f32 %v511_v56, %v271_v58 }
 0x218   :  { %280 = vmax.xlane.f32.xlu0 %v272_v59 }
 0x21c   :  { %282 = vmax.xlane.f32.xlu0 %v277_v60 }
 0x2a5   :  { %v281_v61 = vpop.xlane.xlu0 %280 }
 0x2a6   :  { %v284_v62 = vsub.f32 %v272_v59, %v281_v61 }
 0x2a8   :  { %v286_v63 = vmul.f32 1.442695, %v284_v62 }
 0x2a9   :  { %v283_v0 = vpop.xlane.xlu0 %282 }
 0x2aa   :  { %723 = vpow2.f32 %v286_v63  ;;  %v285_v1 = vsub.f32 %v277_v60, %v283_v0 }
 0x2ac   :  { %v288_v2 = vmul.f32 1.442695, %v285_v1 }
 0x2ae   :  { %725 = vpow2.f32 %v288_v2 }
 0x2b4   :  { %v724_v3 = vpop.eup %723 }
 0x2b5   :  { %290 = vadd.xlane.f32.xlu1 %v724_v3 }
 0x2b8   :  { %v726_v4 = vpop.eup %725 }
 0x2b9   :  { %292 = vadd.xlane.f32.xlu1 %v726_v4 }
 0x342   :  { %v291_v6 = vpop.xlane.xlu1 %290 }
 0x343   :  { %727 = vrcp.f32 %v291_v6 }
 0x346   :  { %v293_v7 = vpop.xlane.xlu1 %292 }
 0x347   :  { %729 = vrcp.f32 %v293_v7 }
 0x34d   :  { %v728_v8 = vpop.eup %727 }
 0x34e   :  { %v296_v9 = vmul.f32 %v728_v8, %v724_v3 }
 0x350   :  { %v303_v15 = vadd.f32 %v512_v11, %v296_v9 }
 0x351   :  { %v730_v10 = vpop.eup %729 }
 0x352   :  { %v297_v12 = vmul.f32 %v730_v10, %v726_v4 }
 0x354   :  { %v304_v16 = vadd.f32 %v512_v11, %v297_v12 }
 0x356   :  { %v673_v17 = vpack.c.bf16 %v304_v16, %v303_v15 }
 0x358   :  { %674 = vmatprep.subr.bf16.mxu0 %v673_v17 }
 0x359   :  { %676 = vmatpush3.bf16.msra.mxu0 %v673_v17 }
 0x35a   :  { %678 = vmatprep.subr.bf16.mxu0 %v677_v18 }
 0x35c   :  { %596 = vmatmul.mubr.msk.f32.vlgmr.msra.gmra.mrb[0].mxu0 %vm307_vm1, %v306_v21 }
 0x35d   :  { %680 = vmatpush3.bf16.msra.mxu0 %v677_v18 }
 0x35e   :  { %682 = vmatprep.subr.bf16.mxu0 %v681_v22 }
 0x361   :  { %684 = vmatpush3.bf16.msra.mxu0 %v681_v22 }
 0x362   :  { %686 = vmatprep.subr.bf16.mxu0 %v685_v25 }
 0x365   :  { %688 = vmatpush3.bf16.msra.mxu0 %v685_v25 }
 0x366   :  { %690 = vmatprep.subr.bf16.mxu0 %v689_v28 }
 0x369   :  { %692 = vmatpush3.bf16.msra.mxu0 %v689_v28 }
 0x36a   :  { %694 = vmatprep.subr.bf16.mxu0 %v693_v31 }
 0x36d   :  { %696 = vmatpush3.bf16.msra.mxu0 %v693_v31 }
 0x36e   :  { %698 = vmatprep.subr.bf16.mxu0 %v697_v34 }
 0x371   :  { %700 = vmatpush3.bf16.msra.mxu0 %v697_v34 }
 0x372   :  { %702 = vmatprep.subr.bf16.mxu0 %v701_v37 }
 0x375   :  { %704 = vmatpush3.bf16.msra.mxu0 %v701_v37 }
 0x376   :  { %706 = vmatprep.subr.bf16.mxu0 %v705_v41 }
 0x379   :  { %708 = vmatpush3.bf16.msra.mxu0 %v705_v41 }
 0x42f   :  { %v597_v42 = vpop.f32.mrb[0].mxu0 }
 0x430   :  { %v390_v43 = vmul.f32 %v597_v42, %v952_v44  ;;  %v380_v45 = vpop.f32.mrb[1].mxu0 }
 0x431   :  { %v389_v46 = vmul.f32 %v380_v45, %v950_v40 }
 0x433   :  { %630 = vmatprep.mubr.f32.mxu0 %v389_v46 }
 0x434   :  { %631 = vmatmul.mubr.f32.vlgmr.msra.gmra.mrb[2].mxu0 %v390_v43 }
 0x507   :  { %v632_v48 = vpop.f32.mrb[2].mxu0 }
 0x508   :  { %v484_v49 = vadd.f32 %v632_v48, %v515_v47  ;;  %v478_v50 = vpop.f32.mrb[3].mxu0 }
 0x509   :  { %v479_v51 = vadd.f32 %v515_v47, %v478_v50 }
 0x50a   :  { %488 = vst.msk [vmem:[#allocation10 + $0x8] sm:$0xff] %vm83_vm0, %v484_v49 }
 0x50b   :  { %487 = vst.msk [vmem:[#allocation10] sm:$0xff] %vm83_vm0, %v479_v51 }
 0x50c   :  { %830 = shalt.err (!%p827_p8)
}
 0x50d   :  { %s831_s17 = scalar_lea.hbm %s979_s4, 256 }
 0x50e   :  { %p832_p9 = scmp.ne.s32.totalorder %s979_s4, %s831_s17  ;;  %p835_p10 = scmp.lt.u32.totalorder %s831_s17, %s979_s4 }
 0x510   :  { %p837_p11 = pnand %p835_p10, %p832_p9 }
 0x512   :  { %840 = shalt.err (!%p837_p11)
}
 0x513   :  { %500 = dma.vmem_to_hbm [thread:$0]  %s495_s12, 256, %s979_s4, [#allocation4], %s853_s1, %s853_s1, %s854_s13  }
 0x514   :  { %847 = dma.done.wait [#allocation4], 256  }
 0x515   :  { %848 = vsyncadd [#allocation4], 4294967040 }
 0x516   :  { %504 = vsyncpa [#allocation3], 1 }
 0x517   :  { %505 = vsyncpa [#allocation6], 1 }
 0x518   :  { %506 = vsyncpa [#allocation9], 1 }
 0x519   :  { %507 = vsyncpa [#allocation4], 1 }

</bundles_post_ra>
